<compile_context>
chip_gen: v7x
topology: tpu7x:2x2x1
jax: 0.10.0
libtpu: 0.0.40
codegen_flags: <defaults>
</compile_context>

<pallas_src>
import functools

import numpy as np

import jax
import jax.numpy as jnp
from jax.experimental import pallas as pl
from jax.experimental.pallas import tpu as pltpu


TM = 512          # rows (B*H*W) per grid tile — >=512 reaches ~85% HBM roofline
LANE = 128        # lane width: Cout and Cin are padded to multiples of this


def _round_up(x, m):
    return ((x + m - 1) // m) * m


# ----------------------------------------------------------------------------
# Pallas kernel: fused 1x1-conv heads.  One grid step = one M-tile of one head.
# ----------------------------------------------------------------------------
def _fused_head_kernel(hid_ref, x_ref, w_ref, b_ref, o_ref):
    # hid_ref: (num_tiles,) i32 in SMEM (scalar prefetch; consumed by index_maps)
    # x_ref  : (TM, Cin_pad)            bf16
    # w_ref  : (1, Cin_pad, Cout_pad)   bf16   (head-selected slab)
    # b_ref  : (1, 1, Cout_pad)         f32    (head-selected slab)
    # o_ref  : (TM, Cout_pad)           f32    (lane-dense, unmasked stores)
    acc = jnp.dot(x_ref[...], w_ref[0], preferred_element_type=jnp.float32)
    o_ref[...] = acc + b_ref[0]


def yoloface_heads_fused(feats, weights, biases):
    """Apply the three 1x1-Conv2d yolo heads as a single fused Pallas call.

    feats  : list of (B, Cin_h, H_h, W_h) f32 NCHW feature maps [P3, P4, P5]
    weights: list of (Cout, Cin_h) f32  (PyTorch Conv2d weight squeezed from (Cout,Cin,1,1))
    biases : list of (Cout,) f32
    returns: list of (B, Cout, H_h, W_h) f32 NCHW outputs, same order as feats
    """
    n_heads = len(feats)
    cout = weights[0].shape[0]
    assert all(w.shape[0] == cout for w in weights)
    cin_pad = _round_up(max(f.shape[1] for f in feats), LANE)
    cout_pad = _round_up(cout, LANE)

    # Flatten each feature map to (M, Cin), zero-pad channels to cin_pad and
    # rows to a multiple of TM so no tile spans two heads, then concatenate.
    segs = []       # (B, H, W, m, m_pad) per head
    x_chunks = []
    for f in feats:
        B, cin, H, W = f.shape
        m = B * H * W
        m_pad = _round_up(m, TM)
        xf = jnp.transpose(f, (0, 2, 3, 1)).reshape(m, cin)
        xf = jnp.pad(xf, ((0, m_pad - m), (0, cin_pad - cin)))
        x_chunks.append(xf)
        segs.append((B, H, W, m, m_pad))
    x_all = jnp.concatenate(x_chunks, axis=0).astype(jnp.bfloat16)
    m_total = x_all.shape[0]
    num_tiles = m_total // TM

    # Stacked, zero-padded weight/bias slabs (one per head).
    w_stack = jnp.zeros((n_heads, cin_pad, cout_pad), jnp.float32)
    b_stack = jnp.zeros((n_heads, 1, cout_pad), jnp.float32)
    for h, (w, b) in enumerate(zip(weights, biases)):
        cin_h = w.shape[1]
        w_stack = w_stack.at[h, :cin_h, :cout].set(jnp.transpose(w))
        b_stack = b_stack.at[h, 0, :cout].set(b)
    w_stack = w_stack.astype(jnp.bfloat16)

    # Static per-tile head index (scalar prefetch -> SMEM, drives index_maps).
    head_ids = jnp.asarray(np.concatenate(
        [np.full(seg[4] // TM, h, np.int32) for h, seg in enumerate(segs)]))

    out = pl.pallas_call(
        _fused_head_kernel,
        out_shape=jax.ShapeDtypeStruct((m_total, cout_pad), jnp.float32),
        grid_spec=pltpu.PrefetchScalarGridSpec(
            num_scalar_prefetch=1,
            grid=(num_tiles,),
            in_specs=[
                pl.BlockSpec((TM, cin_pad), lambda i, hid: (i, 0)),
                pl.BlockSpec((1, cin_pad, cout_pad),
                             lambda i, hid: (hid[i], 0, 0)),
                pl.BlockSpec((1, 1, cout_pad),
                             lambda i, hid: (hid[i], 0, 0)),
            ],
            out_specs=pl.BlockSpec((TM, cout_pad), lambda i, hid: (i, 0)),
        ),
        compiler_params=pltpu.CompilerParams(
            # Single M axis, independent tiles -> megacore sharding on v7x.
            dimension_semantics=("parallel",)),
    )(head_ids, x_all, w_stack, b_stack)

    # Slice each head's rows / the real Cout back out and restore NCHW.
    outs = []
    off = 0
    for (B, H, W, m, m_pad) in segs:
        y = out[off:off + m, :cout].reshape(B, H, W, cout)
        outs.append(jnp.transpose(y, (0, 3, 1, 2)))
        off += m_pad
    return outs


# ----------------------------------------------------------------------------
# Stand-in feature extractor.
# TODO(synk): CSPDarknet / PAN / SSH definitions are not part of the given
# module source; replaced by a deterministic avg-pool + fixed channel
# projection producing P3/P4/P5 with the correct shapes (strides 8/16/32,
# channels base*4 / base*8 / base*16).
# ----------------------------------------------------------------------------
def make_feature_maps(x_nchw, base_channels, key):
    B, C, H, W = x_nchw.shape
    feats = []
    for stride, mul in ((8, 4), (16, 8), (32, 16)):
        h, w = H // stride, W // stride
        pooled = x_nchw.reshape(B, C, h, stride, w, stride).mean(axis=(3, 5))
        cout = base_channels * mul
        key, sub = jax.random.split(key)
        proj = jax.random.normal(sub, (cout, C), dtype=jnp.float32) * 0.1
        feats.append(jnp.einsum("bchw,oc->bohw", pooled, proj))
    return feats  # [P3, P4, P5]


# ----------------------------------------------------------------------------
# YoloFace forward (heads fused into one Pallas launch)
# ----------------------------------------------------------------------------
def yoloface_forward(x, params, base_channels):
    P3, P4, P5 = make_feature_maps(x, base_channels, jax.random.PRNGKey(42))
    out2, out1, out0 = yoloface_heads_fused(
        [P3, P4, P5],
        [params["w_p3"], params["w_p4"], params["w_p5"]],
        [params["b_p3"], params["b_p4"], params["b_p5"]],
    )
    return out0, out1, out2


def init_params(key, base_channels,
                anchors_mask=((6, 7, 8), (3, 4, 5), (0, 1, 2)), num_classes=0):
    out_ch = len(anchors_mask[0]) * (5 + num_classes + 10)  # 3 * 15 = 45
    chans = {"p3": base_channels * 4, "p4": base_channels * 8,
             "p5": base_channels * 16}
    params = {}
    for name, cin in chans.items():
        key, kw, kb = jax.random.split(key, 3)
        params[f"w_{name}"] = jax.random.normal(kw, (out_ch, cin), jnp.float32) * 0.05
        params[f"b_{name}"] = jax.random.normal(kb, (out_ch,), jnp.float32) * 0.01
    return params


if __name__ == "__main__":
    # Small synthetic configuration: base_channels=8 (instead of 64 for phi='l')
    # so P3/P4/P5 have 32/64/128 channels; input spatial 64 -> strides 8/16/32.
    base_channels = 8
    key = jax.random.PRNGKey(0)
    kx, kp = jax.random.split(key)
    x = jax.random.normal(kx, (2, 3, 64, 64), dtype=jnp.float32)
    params = init_params(kp, base_channels)

    fwd = jax.jit(functools.partial(yoloface_forward,
                                    params=params, base_channels=base_channels))
    out0, out1, out2 = fwd(x)
    jax.block_until_ready((out0, out1, out2))

    # Shape checks (match nn.Conv2d NCHW outputs).
    assert out0.shape == (2, 45, 2, 2)
    assert out1.shape == (2, 45, 4, 4)
    assert out2.shape == (2, 45, 8, 8)

    # Numerical check vs. a plain-JAX reference of the heads (inputs rounded to
    # bf16 to match the kernel's bf16-input / f32-accumulate path).
    P3, P4, P5 = make_feature_maps(x, base_channels, jax.random.PRNGKey(42))

    def ref_head(p, w, b):
        p_bf = p.astype(jnp.bfloat16).astype(jnp.float32)
        w_bf = w.astype(jnp.bfloat16).astype(jnp.float32)
        y = jnp.einsum("bchw,oc->bohw", p_bf, w_bf,
                       precision=jax.lax.Precision.HIGHEST)
        return y + b[None, :, None, None]

    ref0 = ref_head(P5, params["w_p5"], params["b_p5"])
    ref1 = ref_head(P4, params["w_p4"], params["b_p4"])
    ref2 = ref_head(P3, params["w_p3"], params["b_p3"])
    assert jnp.allclose(out0, ref0, atol=1e-4, rtol=1e-3)
    assert jnp.allclose(out1, ref1, atol=1e-4, rtol=1e-3)
    assert jnp.allclose(out2, ref2, atol=1e-4, rtol=1e-3)

    print("KERNEL_OK")
</pallas_src>

<mosaic_0001>
module attributes {stable_mosaic.version = 11 : i64} {
  func.func @_fused_head_kernel(%arg0: i32, %arg1: memref<3xi32, #tpu.memory_space<smem>>, %arg2: memref<512x128xbf16, #tpu.memory_space<vmem>>, %arg3: memref<1x128x128xbf16, #tpu.memory_space<vmem>>, %arg4: memref<1x1x128xf32, #tpu.memory_space<vmem>>, %arg5: memref<512x128xf32, #tpu.memory_space<vmem>>) attributes {dimension_semantics = [#tpu.dimension_semantics<parallel>], iteration_bounds = array<i64: 3>, scalar_prefetch = 1 : i64, scratch_operands = 0 : i64, tpu.core_type = #tpu.core_type<tc>, window_params = [{transform_indices = @transform_0, window_bounds = array<i64: 512, 128>}, {transform_indices = @transform_1, window_bounds = array<i64: 1, 128, 128>}, {transform_indices = @transform_2, window_bounds = array<i64: 1, 1, 128>}, {transform_indices = @transform_3, window_bounds = array<i64: 512, 128>}]} {
    %c0 = arith.constant 0 : index
    %c0_0 = arith.constant 0 : index
    %0 = vector.load %arg2[%c0, %c0_0] : memref<512x128xbf16, #tpu.memory_space<vmem>>, vector<512x128xbf16>
    %c0_1 = arith.constant 0 : index
    %c0_2 = arith.constant 0 : index
    %c0_3 = arith.constant 0 : index
    %1 = vector.load %arg3[%c0_1, %c0_2, %c0_3] : memref<1x128x128xbf16, #tpu.memory_space<vmem>>, vector<1x128x128xbf16>
    %2 = vector.shape_cast %1 : vector<1x128x128xbf16> to vector<128x128xbf16>
    %cst = arith.constant dense<0.000000e+00> : vector<512x128xf32>
    %3 = tpu.matmul %0, %2, %cst {dimension_numbers = #tpu.dot_dimension_numbers<[1], [0], [0], [1], [0, 0, 1, 1], [], []>} : vector<512x128xbf16>, vector<128x128xbf16>, vector<512x128xf32> -> vector<512x128xf32>
    %c0_4 = arith.constant 0 : index
    %c0_5 = arith.constant 0 : index
    %c0_6 = arith.constant 0 : index
    %4 = vector.load %arg4[%c0_4, %c0_5, %c0_6] : memref<1x1x128xf32, #tpu.memory_space<vmem>>, vector<1x1x128xf32>
    %5 = vector.shape_cast %4 : vector<1x1x128xf32> to vector<1x128xf32>
    %6 = vector.broadcast %5 : vector<1x128xf32> to vector<512x128xf32>
    %7 = arith.addf %3, %6 : vector<512x128xf32>
    %c0_7 = arith.constant 0 : index
    %c0_8 = arith.constant 0 : index
    %8 = vector.load %arg5[%c0_7, %c0_8] : memref<512x128xf32, #tpu.memory_space<vmem>>, vector<512x128xf32>
    tpu.vector_store %arg5[%c0_7, %c0_8], %7 {strides = array<i32>} : memref<512x128xf32, #tpu.memory_space<vmem>>, vector<512x128xf32>,
    return
  }
  func.func @transform_0(%arg0: i32, %arg1: memref<3xi32, #tpu.memory_space<smem>>) -> (i32, i32) {
    %c0_i32 = arith.constant 0 : i32
    %c0_i32_0 = arith.constant 0 : i32
    return %arg0, %c0_i32 : i32, i32
  }
  func.func @transform_1(%arg0: i32, %arg1: memref<3xi32, #tpu.memory_space<smem>>) -> (i32, i32, i32) {
    %0 = arith.index_cast %arg0 : i32 to index
    %1 = memref.load %arg1[%0] : memref<3xi32, #tpu.memory_space<smem>>
    %c0_i32 = arith.constant 0 : i32
    %c0_i32_0 = arith.constant 0 : i32
    %c0_i32_1 = arith.constant 0 : i32
    return %1, %c0_i32, %c0_i32_0 : i32, i32, i32
  }
  func.func @transform_2(%arg0: i32, %arg1: memref<3xi32, #tpu.memory_space<smem>>) -> (i32, i32, i32) {
    %0 = arith.index_cast %arg0 : i32 to index
    %1 = memref.load %arg1[%0] : memref<3xi32, #tpu.memory_space<smem>>
    %c0_i32 = arith.constant 0 : i32
    %c0_i32_0 = arith.constant 0 : i32
    %c0_i32_1 = arith.constant 0 : i32
    return %1, %c0_i32, %c0_i32_0 : i32, i32, i32
  }
  func.func @transform_3(%arg0: i32, %arg1: memref<3xi32, #tpu.memory_space<smem>>) -> (i32, i32) {
    %c0_i32 = arith.constant 0 : i32
    %c0_i32_0 = arith.constant 0 : i32
    return %arg0, %c0_i32 : i32, i32
  }
}

</mosaic_0001>

<bundles_post_ra>
// kernel: yoloface_forward.1
= control target key start
LH: loop header
LB: loop body
LE: loop exit
PB: predicated region body
PF: predicated region fallthrough
CT: control target
= control target key end

     0   :  { %s1486_s0 = inlined_call_operand.vmem [shape: s32[3], index: 0, kind: input, shape index: {}]   ;;  %s1487_s1 = inlined_call_operand.vmem [shape: bf16[1536,128], index: 1, kind: input, shape index: {}]   ;;  %s1488_s2 = inlined_call_operand.vmem [shape: bf16[3,128,128], index: 2, kind: input, shape index: {}]   ;;  %s1489_s3 = inlined_call_operand.vmem [shape: f32[3,1,128], index: 3, kind: input, shape index: {}]   ;;  %s1490_s4 = inlined_call_operand.vmem [shape: f32[1536,128], index: 4, kind: output, shape index: {}]  }
   0x1   :  { %s9_s17 = sshll.u32 %s1486_s0, 4  ;;  %s10_s17 = int_to_ptr.vmem [resolvable:$true] %s9_s17 }
   0x2   :  { %s1227_s18 = scalar_lea.vmem %s10_s17, 16  ;;  %p1232_p1 = scmp.lt.s32.totalorder %s10_s17, %s10_s17 }
   0x3   :  { %p1228_p0 = scmp.ne.s32.totalorder %s10_s17, %s1227_s18  ;;  %p1233_p2 = scmp.lt.s32.totalorder %s1227_s18, %s1227_s18 }
   0x5   :  { %p1234_p3 = por %p1233_p2, %p1232_p1 }
   0x7   :  { %p1235_p4 = pnand %p1234_p3, %p1228_p0 }
   0x9   :  { %1238 = shalt.err (!%p1235_p4)  }
   0xa   :  { %s1249_s19 = smov [#allocation3]  }
   0xb   :  { %12 = dma.vmem_to_smem %s10_s17, 16, %s1249_s19, [#allocation2] }
   0xc   :  { %1243 = dma.done.wait [#allocation2], 16 }
   0xd   :  { %1244 = vsyncadd [#allocation2], 4294967280 }
   0xe   :  { %14 = sfence }
   0xf   :  { %s1278_s20 = smov 0  }
  0x10 LB: > { %s1284_s0 = sadd.s32 4294967295, %s1247_s20   ;;  %p991_p5 = scmp.ge.s32.totalorder %s1247_s20, 1  ;;  %s1247_s20 = sphi %s1278_s20, %s20_s20  }
  0x11   : > { %p171_p6 = scmp.lt.s32.totalorder %s1247_s20, 4 }
  0x13   : > { %p172_p7 = pnand %p991_p5, %p171_p6 }
  0x14   : > { %s211_s21 = sld [smem:[#allocation3 + %s1284_s0]] (!%p172_p7)  ;;  %s992_s22 = sshll.u32 (!%p172_p7), %s1284_s0, 6 }
  0x15   : > { %175 = sbr.rel (%p172_p7) target bundleno = 340 (0x154), region = 32  ;;  %p206_p8 = scmp.lt.s32.totalorder (!%p172_p7), %s992_s22, 191 }
  0x16   : > { %s218_s5 = sld [smem:[#allocation3 + %s1284_s0]] (!%p172_p7) }
  0x1a   : > { %p212_p9 = scmp.lt.s32.totalorder (!%p172_p7), %s211_s21, 2 }
  0x1c   : > { %s1492_s22 = smov (!%p206_p8, %s992_s22), 191  ;;  %s1494_s21 = smov (!%p212_p9, %s211_s21), 2 }
  0x1d   : > { %s993_s23 = sshll.u32 %s1492_s22, 2  ;;  %s1041_s27 = sshll.u32 %s1494_s21, 6 }
  0x1e   : > { %s1296_s26 = scalar_lea.vmem %s1487_s1, %s993_s23  ;;  %s1303_s30 = scalar_lea.vmem %s1488_s2, %s1041_s27 }
  0x1f   : > { %v1195_v0 = vld [vmem:[%s1296_s26] sm:$0xff]   ;;  %v1188_v3 = vld [vmem:[%s1303_s30 + $0x8] sm:$0xff]   ;;  %v1189_v4 = vld [vmem:[%s1303_s30 + $0x10] sm:$0xff]   ;;  %p219_p10 = scmp.lt.s32.totalorder %s218_s5, 2  ;;  %s997_s9 = sshll.u32 %s1492_s22, 3 }
  0x20   : > { %v1196_v1 = vld [vmem:[%s1296_s26 + $0x80] sm:$0xff]   ;;  %1098 = vmatprep.mubr.bf16.mxu0 %v1195_v0  ;;  %v1190_v5 = vld [vmem:[%s1303_s30 + $0x18] sm:$0xff]   ;;  %v1192_v7 = vld [vmem:[%s1303_s30 + $0x28] sm:$0xff]   ;;  %s1353_s12 = scalar_lea.vmem %s1490_s4, %s997_s9 }
  0x21   : > { %1130 = vmatprep.mubr.bf16.mxu1 %v1196_v1  ;;  %v1187_v2 = vld [vmem:[%s1303_s30] sm:$0xff]   ;;  %v1193_v8 = vld [vmem:[%s1303_s30 + $0x30] sm:$0xff]   ;;  %v1194_v9 = vld [vmem:[%s1303_s30 + $0x38] sm:$0xff]   ;;  %s1496_s5 = smov (!%p219_p10, %s218_s5), 2 }
  0x22   : > { %1082 = vmatprep.subr.bf16.mxu0 %v1187_v2  ;;  %1162 = vmatprep.subr.bf16.mxu1 %v1187_v2  ;;  %v1191_v6 = vld [vmem:[%s1303_s30 + $0x20] sm:$0xff]   ;;  %v1197_v10 = vld [vmem:[%s1296_s26 + $0x8] sm:$0xff]   ;;  %v1199_v12 = vld [vmem:[%s1296_s26 + $0x10] sm:$0xff]   ;;  %s221_s8 = scalar_lea.vmem %s1489_s3, %s1496_s5 }
  0x23   : > { %1083 = vmatpush3.bf16.msra.mxu0 %v1187_v2  ;;  %1170 = vmatpush3.bf16.msra.mxu1 %v1187_v2  ;;  %v1198_v11 = vld [vmem:[%s1296_s26 + $0x88] sm:$0xff]   ;;  %v1200_v13 = vld [vmem:[%s1296_s26 + $0x90] sm:$0xff]   ;;  %v1201_v14 = vld [vmem:[%s1296_s26 + $0x18] sm:$0xff]  }
  0x24   : > { %1084 = vmatprep.subr.bf16.mxu0 %v1188_v3  ;;  %1163 = vmatprep.subr.bf16.mxu1 %v1188_v3  ;;  %v1202_v15 = vld [vmem:[%s1296_s26 + $0x98] sm:$0xff]   ;;  %v1203_v16 = vld [vmem:[%s1296_s26 + $0x20] sm:$0xff]   ;;  %v1205_v18 = vld [vmem:[%s1296_s26 + $0x28] sm:$0xff]  }
  0x25   : > { %v1204_v17 = vld [vmem:[%s1296_s26 + $0xa0] sm:$0xff]   ;;  %v1206_v19 = vld [vmem:[%s1296_s26 + $0xa8] sm:$0xff]   ;;  %v1207_v20 = vld [vmem:[%s1296_s26 + $0x30] sm:$0xff]  }
  0x26   : > { %v1208_v21 = vld [vmem:[%s1296_s26 + $0xb0] sm:$0xff]   ;;  %v1209_v22 = vld [vmem:[%s1296_s26 + $0x38] sm:$0xff]   ;;  %v1211_v24 = vld [vmem:[%s1296_s26 + $0x40] sm:$0xff]  }
  0x27   : > { %1085 = vmatpush3.bf16.msra.mxu0 %v1188_v3  ;;  %1171 = vmatpush3.bf16.msra.mxu1 %v1188_v3  ;;  %v1210_v23 = vld [vmem:[%s1296_s26 + $0xb8] sm:$0xff]   ;;  %v1212_v25 = vld [vmem:[%s1296_s26 + $0xc0] sm:$0xff]   ;;  %v1213_v26 = vld [vmem:[%s1296_s26 + $0x48] sm:$0xff]  }
  0x28   : > { %1086 = vmatprep.subr.bf16.mxu0 %v1189_v4  ;;  %1164 = vmatprep.subr.bf16.mxu1 %v1189_v4  ;;  %v1214_v27 = vld [vmem:[%s1296_s26 + $0xc8] sm:$0xff]   ;;  %v1215_v28 = vld [vmem:[%s1296_s26 + $0x50] sm:$0xff]   ;;  %v1217_v30 = vld [vmem:[%s1296_s26 + $0x58] sm:$0xff]  }
  0x29   : > { %v1216_v29 = vld [vmem:[%s1296_s26 + $0xd0] sm:$0xff]   ;;  %v1218_v31 = vld [vmem:[%s1296_s26 + $0xd8] sm:$0xff]   ;;  %v1219_v32 = vld [vmem:[%s1296_s26 + $0x60] sm:$0xff]  }
  0x2a   : > { %v1220_v33 = vld [vmem:[%s1296_s26 + $0xe0] sm:$0xff]   ;;  %v1221_v34 = vld [vmem:[%s1296_s26 + $0x68] sm:$0xff]   ;;  %v1223_v36 = vld [vmem:[%s1296_s26 + $0x70] sm:$0xff]  }
  0x2b   : > { %1087 = vmatpush3.bf16.msra.mxu0 %v1189_v4  ;;  %1172 = vmatpush3.bf16.msra.mxu1 %v1189_v4  ;;  %v1222_v35 = vld [vmem:[%s1296_s26 + $0xe8] sm:$0xff]   ;;  %v1224_v37 = vld [vmem:[%s1296_s26 + $0xf0] sm:$0xff]   ;;  %v1225_v38 = vld [vmem:[%s1296_s26 + $0x78] sm:$0xff]  }
  0x2c   : > { %1088 = vmatprep.subr.bf16.mxu0 %v1190_v5  ;;  %1165 = vmatprep.subr.bf16.mxu1 %v1190_v5  ;;  %v1226_v39 = vld [vmem:[%s1296_s26 + $0xf8] sm:$0xff]   ;;  %v1348_v40 = vld [vmem:[%s221_s8] ss:$0 sm:$0xff] }
  0x2f   : > { %1089 = vmatpush3.bf16.msra.mxu0 %v1190_v5  ;;  %1173 = vmatpush3.bf16.msra.mxu1 %v1190_v5 }
  0x30   : > { %1090 = vmatprep.subr.bf16.mxu0 %v1191_v6  ;;  %1166 = vmatprep.subr.bf16.mxu1 %v1191_v6 }
  0x33   : > { %1091 = vmatpush3.bf16.msra.mxu0 %v1191_v6  ;;  %1174 = vmatpush3.bf16.msra.mxu1 %v1191_v6 }
  0x34   : > { %1092 = vmatprep.subr.bf16.mxu0 %v1192_v7  ;;  %1167 = vmatprep.subr.bf16.mxu1 %v1192_v7 }
  0x37   : > { %1093 = vmatpush3.bf16.msra.mxu0 %v1192_v7  ;;  %1175 = vmatpush3.bf16.msra.mxu1 %v1192_v7 }
  0x38   : > { %1094 = vmatprep.subr.bf16.mxu0 %v1193_v8  ;;  %1168 = vmatprep.subr.bf16.mxu1 %v1193_v8 }
  0x3b   : > { %1095 = vmatpush3.bf16.msra.mxu0 %v1193_v8  ;;  %1176 = vmatpush3.bf16.msra.mxu1 %v1193_v8 }
  0x3c   : > { %1096 = vmatprep.subr.bf16.mxu0 %v1194_v9  ;;  %1169 = vmatprep.subr.bf16.mxu1 %v1194_v9 }
  0x3f   : > { %1097 = vmatpush3.bf16.msra.mxu0 %v1194_v9  ;;  %1177 = vmatpush3.bf16.msra.mxu1 %v1194_v9 }
  0x42   : > { %1099 = vmatmul.mubr.bf16.vlgmr.msra.gmra.mrb[0].mxu0 %v1197_v10  ;;  %1131 = vmatmul.mubr.bf16.vlgmr.msra.gmra.mrb[0].mxu1 %v1198_v11 }
  0x43   : > { %1102 = vmatprep.mubr.bf16.mxu0 %v1199_v12  ;;  %1134 = vmatprep.mubr.bf16.mxu1 %v1200_v13 }
  0x4a   : > { %1103 = vmatmul.mubr.bf16.gmra.mrb[4].mxu0 %v1201_v14  ;;  %1135 = vmatmul.mubr.bf16.gmra.mrb[4].mxu1 %v1202_v15 }
  0x4b   : > { %1106 = vmatprep.mubr.bf16.mxu0 %v1203_v16  ;;  %1138 = vmatprep.mubr.bf16.mxu1 %v1204_v17 }
  0x52   : > { %1107 = vmatmul.mubr.bf16.gmra.mrb[8].mxu0 %v1205_v18  ;;  %1139 = vmatmul.mubr.bf16.gmra.mrb[8].mxu1 %v1206_v19 }
  0x53   : > { %1110 = vmatprep.mubr.bf16.mxu0 %v1207_v20  ;;  %1142 = vmatprep.mubr.bf16.mxu1 %v1208_v21 }
  0x5a   : > { %1111 = vmatmul.mubr.bf16.gmra.mrb[12].mxu0 %v1209_v22  ;;  %1143 = vmatmul.mubr.bf16.gmra.mrb[12].mxu1 %v1210_v23 }
  0x5b   : > { %1114 = vmatprep.mubr.bf16.mxu0 %v1211_v24  ;;  %1146 = vmatprep.mubr.bf16.mxu1 %v1212_v25 }
  0x62   : > { %1115 = vmatmul.mubr.bf16.gmra.mrb[16].mxu0 %v1213_v26  ;;  %1147 = vmatmul.mubr.bf16.gmra.mrb[16].mxu1 %v1214_v27 }
  0x63   : > { %1118 = vmatprep.mubr.bf16.mxu0 %v1215_v28  ;;  %1150 = vmatprep.mubr.bf16.mxu1 %v1216_v29 }
  0x6a   : > { %1119 = vmatmul.mubr.bf16.gmra.mrb[20].mxu0 %v1217_v30  ;;  %1151 = vmatmul.mubr.bf16.gmra.mrb[20].mxu1 %v1218_v31 }
  0x6b   : > { %1122 = vmatprep.mubr.bf16.mxu0 %v1219_v32  ;;  %1154 = vmatprep.mubr.bf16.mxu1 %v1220_v33 }
  0x72   : > { %1123 = vmatmul.mubr.bf16.gmra.mrb[24].mxu0 %v1221_v34  ;;  %1155 = vmatmul.mubr.bf16.gmra.mrb[24].mxu1 %v1222_v35 }
  0x73   : > { %1126 = vmatprep.mubr.bf16.mxu0 %v1223_v36  ;;  %1158 = vmatprep.mubr.bf16.mxu1 %v1224_v37 }
  0x7a   : > { %1127 = vmatmul.mubr.bf16.gmra.mrb[28].mxu0 %v1225_v38  ;;  %1159 = vmatmul.mubr.bf16.gmra.mrb[28].mxu1 %v1226_v39 }
 0x115   : > { %v1100_v41 = vpop.f32.mrb[0].mxu0  ;;  %v1132_v42 = vpop.f32.mrb[0].mxu1 }
 0x116   : > { %v600_v43 = vadd.f32 %v1100_v41, %v1348_v40  ;;  %v728_v44 = vadd.f32 %v1132_v42, %v1348_v40  ;;  %v591_v45 = vpop.f32.mrb[1].mxu0  ;;  %v719_v46 = vpop.f32.mrb[1].mxu1 }
 0x117   : > { %v592_v47 = vadd.f32 %v1348_v40, %v591_v45  ;;  %v720_v48 = vadd.f32 %v1348_v40, %v719_v46  ;;  %v1101_v49 = vpop.f32.mrb[2].mxu0  ;;  %v1133_v50 = vpop.f32.mrb[2].mxu1 }
 0x118   : > { %848 = vst [vmem:[%s1353_s12 + $0x10] sm:$0xff] %v600_v43  ;;  %880 = vst [vmem:[%s1353_s12 + $0x110] sm:$0xff] %v728_v44  ;;  %v603_v51 = vadd.f32 %v1101_v49, %v1348_v40  ;;  %v731_v52 = vadd.f32 %v1133_v50, %v1348_v40  ;;  %v594_v53 = vpop.f32.mrb[3].mxu0  ;;  %v722_v54 = vpop.f32.mrb[3].mxu1 }
 0x119   : > { %846 = vst [vmem:[%s1353_s12] sm:$0xff] %v592_v47  ;;  %878 = vst [vmem:[%s1353_s12 + $0x100] sm:$0xff] %v720_v48  ;;  %v595_v55 = vadd.f32 %v1348_v40, %v594_v53  ;;  %v723_v56 = vadd.f32 %v1348_v40, %v722_v54 }
 0x11a   : > { %849 = vst [vmem:[%s1353_s12 + $0x18] sm:$0xff] %v603_v51  ;;  %881 = vst [vmem:[%s1353_s12 + $0x118] sm:$0xff] %v731_v52 }
 0x11b   : > { %847 = vst [vmem:[%s1353_s12 + $0x8] sm:$0xff] %v595_v55  ;;  %879 = vst [vmem:[%s1353_s12 + $0x108] sm:$0xff] %v723_v56 }
 0x11d   : > { %v1104_v57 = vpop.f32.mrb[4].mxu0  ;;  %v1136_v58 = vpop.f32.mrb[4].mxu1 }
 0x11e   : > { %v616_v59 = vadd.f32 %v1104_v57, %v1348_v40  ;;  %v744_v60 = vadd.f32 %v1136_v58, %v1348_v40  ;;  %v607_v61 = vpop.f32.mrb[5].mxu0  ;;  %v735_v62 = vpop.f32.mrb[5].mxu1 }
 0x11f   : > { %v608_v63 = vadd.f32 %v1348_v40, %v607_v61  ;;  %v736_v0 = vadd.f32 %v1348_v40, %v735_v62  ;;  %v1105_v1 = vpop.f32.mrb[6].mxu0  ;;  %v1137_v2 = vpop.f32.mrb[6].mxu1 }
 0x120   : > { %852 = vst [vmem:[%s1353_s12 + $0x30] sm:$0xff] %v616_v59  ;;  %884 = vst [vmem:[%s1353_s12 + $0x130] sm:$0xff] %v744_v60  ;;  %v619_v3 = vadd.f32 %v1105_v1, %v1348_v40  ;;  %v747_v4 = vadd.f32 %v1137_v2, %v1348_v40  ;;  %v610_v5 = vpop.f32.mrb[7].mxu0  ;;  %v738_v6 = vpop.f32.mrb[7].mxu1 }
 0x121   : > { %850 = vst [vmem:[%s1353_s12 + $0x20] sm:$0xff] %v608_v63  ;;  %882 = vst [vmem:[%s1353_s12 + $0x120] sm:$0xff] %v736_v0  ;;  %v611_v7 = vadd.f32 %v1348_v40, %v610_v5  ;;  %v739_v8 = vadd.f32 %v1348_v40, %v738_v6 }
 0x122   : > { %853 = vst [vmem:[%s1353_s12 + $0x38] sm:$0xff] %v619_v3  ;;  %885 = vst [vmem:[%s1353_s12 + $0x138] sm:$0xff] %v747_v4 }
 0x123   : > { %851 = vst [vmem:[%s1353_s12 + $0x28] sm:$0xff] %v611_v7  ;;  %883 = vst [vmem:[%s1353_s12 + $0x128] sm:$0xff] %v739_v8 }
 0x125   : > { %v1108_v9 = vpop.f32.mrb[8].mxu0  ;;  %v1140_v10 = vpop.f32.mrb[8].mxu1 }
 0x126   : > { %v632_v11 = vadd.f32 %v1108_v9, %v1348_v40  ;;  %v760_v12 = vadd.f32 %v1140_v10, %v1348_v40  ;;  %v623_v13 = vpop.f32.mrb[9].mxu0  ;;  %v751_v14 = vpop.f32.mrb[9].mxu1 }
 0x127   : > { %v624_v15 = vadd.f32 %v1348_v40, %v623_v13  ;;  %v752_v16 = vadd.f32 %v1348_v40, %v751_v14  ;;  %v1109_v17 = vpop.f32.mrb[10].mxu0  ;;  %v1141_v18 = vpop.f32.mrb[10].mxu1 }
 0x128   : > { %856 = vst [vmem:[%s1353_s12 + $0x50] sm:$0xff] %v632_v11  ;;  %888 = vst [vmem:[%s1353_s12 + $0x150] sm:$0xff] %v760_v12  ;;  %v635_v19 = vadd.f32 %v1109_v17, %v1348_v40  ;;  %v763_v20 = vadd.f32 %v1141_v18, %v1348_v40  ;;  %v626_v21 = vpop.f32.mrb[11].mxu0  ;;  %v754_v22 = vpop.f32.mrb[11].mxu1 }
 0x129   : > { %854 = vst [vmem:[%s1353_s12 + $0x40] sm:$0xff] %v624_v15  ;;  %886 = vst [vmem:[%s1353_s12 + $0x140] sm:$0xff] %v752_v16  ;;  %v627_v23 = vadd.f32 %v1348_v40, %v626_v21  ;;  %v755_v24 = vadd.f32 %v1348_v40, %v754_v22 }
 0x12a   : > { %857 = vst [vmem:[%s1353_s12 + $0x58] sm:$0xff] %v635_v19  ;;  %889 = vst [vmem:[%s1353_s12 + $0x158] sm:$0xff] %v763_v20 }
 0x12b   : > { %855 = vst [vmem:[%s1353_s12 + $0x48] sm:$0xff] %v627_v23  ;;  %887 = vst [vmem:[%s1353_s12 + $0x148] sm:$0xff] %v755_v24 }
 0x12d   : > { %v1112_v25 = vpop.f32.mrb[12].mxu0  ;;  %v1144_v26 = vpop.f32.mrb[12].mxu1 }
 0x12e   : > { %v648_v27 = vadd.f32 %v1112_v25, %v1348_v40  ;;  %v776_v28 = vadd.f32 %v1144_v26, %v1348_v40  ;;  %v639_v29 = vpop.f32.mrb[13].mxu0  ;;  %v767_v30 = vpop.f32.mrb[13].mxu1 }
 0x12f   : > { %v640_v31 = vadd.f32 %v1348_v40, %v639_v29  ;;  %v768_v32 = vadd.f32 %v1348_v40, %v767_v30  ;;  %v1113_v33 = vpop.f32.mrb[14].mxu0  ;;  %v1145_v34 = vpop.f32.mrb[14].mxu1 }
 0x130   : > { %860 = vst [vmem:[%s1353_s12 + $0x70] sm:$0xff] %v648_v27  ;;  %892 = vst [vmem:[%s1353_s12 + $0x170] sm:$0xff] %v776_v28  ;;  %v651_v35 = vadd.f32 %v1113_v33, %v1348_v40  ;;  %v779_v36 = vadd.f32 %v1145_v34, %v1348_v40  ;;  %v642_v37 = vpop.f32.mrb[15].mxu0  ;;  %v770_v38 = vpop.f32.mrb[15].mxu1 }
 0x131   : > { %858 = vst [vmem:[%s1353_s12 + $0x60] sm:$0xff] %v640_v31  ;;  %890 = vst [vmem:[%s1353_s12 + $0x160] sm:$0xff] %v768_v32  ;;  %v643_v39 = vadd.f32 %v1348_v40, %v642_v37  ;;  %v771_v41 = vadd.f32 %v1348_v40, %v770_v38 }
 0x132   : > { %861 = vst [vmem:[%s1353_s12 + $0x78] sm:$0xff] %v651_v35  ;;  %893 = vst [vmem:[%s1353_s12 + $0x178] sm:$0xff] %v779_v36 }
 0x133   : > { %859 = vst [vmem:[%s1353_s12 + $0x68] sm:$0xff] %v643_v39  ;;  %891 = vst [vmem:[%s1353_s12 + $0x168] sm:$0xff] %v771_v41 }
 0x135   : > { %v1116_v42 = vpop.f32.mrb[16].mxu0  ;;  %v1148_v43 = vpop.f32.mrb[16].mxu1 }
 0x136   : > { %v664_v44 = vadd.f32 %v1116_v42, %v1348_v40  ;;  %v792_v45 = vadd.f32 %v1148_v43, %v1348_v40  ;;  %v655_v46 = vpop.f32.mrb[17].mxu0  ;;  %v783_v47 = vpop.f32.mrb[17].mxu1 }
 0x137   : > { %v656_v48 = vadd.f32 %v1348_v40, %v655_v46  ;;  %v784_v49 = vadd.f32 %v1348_v40, %v783_v47  ;;  %v1117_v50 = vpop.f32.mrb[18].mxu0  ;;  %v1149_v51 = vpop.f32.mrb[18].mxu1 }
 0x138   : > { %864 = vst [vmem:[%s1353_s12 + $0x90] sm:$0xff] %v664_v44  ;;  %896 = vst [vmem:[%s1353_s12 + $0x190] sm:$0xff] %v792_v45  ;;  %v667_v52 = vadd.f32 %v1117_v50, %v1348_v40  ;;  %v795_v53 = vadd.f32 %v1149_v51, %v1348_v40  ;;  %v658_v54 = vpop.f32.mrb[19].mxu0  ;;  %v786_v55 = vpop.f32.mrb[19].mxu1 }
 0x139   : > { %862 = vst [vmem:[%s1353_s12 + $0x80] sm:$0xff] %v656_v48  ;;  %894 = vst [vmem:[%s1353_s12 + $0x180] sm:$0xff] %v784_v49  ;;  %v659_v56 = vadd.f32 %v1348_v40, %v658_v54  ;;  %v787_v57 = vadd.f32 %v1348_v40, %v786_v55 }
 0x13a   : > { %865 = vst [vmem:[%s1353_s12 + $0x98] sm:$0xff] %v667_v52  ;;  %897 = vst [vmem:[%s1353_s12 + $0x198] sm:$0xff] %v795_v53 }
 0x13b   : > { %863 = vst [vmem:[%s1353_s12 + $0x88] sm:$0xff] %v659_v56  ;;  %895 = vst [vmem:[%s1353_s12 + $0x188] sm:$0xff] %v787_v57 }
 0x13d   : > { %v1120_v58 = vpop.f32.mrb[20].mxu0  ;;  %v1152_v59 = vpop.f32.mrb[20].mxu1 }
 0x13e   : > { %v680_v60 = vadd.f32 %v1120_v58, %v1348_v40  ;;  %v808_v61 = vadd.f32 %v1152_v59, %v1348_v40  ;;  %v671_v62 = vpop.f32.mrb[21].mxu0  ;;  %v799_v63 = vpop.f32.mrb[21].mxu1 }
 0x13f   : > { %v672_v0 = vadd.f32 %v1348_v40, %v671_v62  ;;  %v800_v1 = vadd.f32 %v1348_v40, %v799_v63  ;;  %v1121_v2 = vpop.f32.mrb[22].mxu0  ;;  %v1153_v3 = vpop.f32.mrb[22].mxu1 }
 0x140   : > { %868 = vst [vmem:[%s1353_s12 + $0xb0] sm:$0xff] %v680_v60  ;;  %900 = vst [vmem:[%s1353_s12 + $0x1b0] sm:$0xff] %v808_v61  ;;  %v683_v4 = vadd.f32 %v1121_v2, %v1348_v40  ;;  %v811_v5 = vadd.f32 %v1153_v3, %v1348_v40  ;;  %v674_v6 = vpop.f32.mrb[23].mxu0  ;;  %v802_v7 = vpop.f32.mrb[23].mxu1 }
 0x141   : > { %866 = vst [vmem:[%s1353_s12 + $0xa0] sm:$0xff] %v672_v0  ;;  %898 = vst [vmem:[%s1353_s12 + $0x1a0] sm:$0xff] %v800_v1  ;;  %v675_v8 = vadd.f32 %v1348_v40, %v674_v6  ;;  %v803_v9 = vadd.f32 %v1348_v40, %v802_v7 }
 0x142   : > { %869 = vst [vmem:[%s1353_s12 + $0xb8] sm:$0xff] %v683_v4  ;;  %901 = vst [vmem:[%s1353_s12 + $0x1b8] sm:$0xff] %v811_v5 }
 0x143   : > { %867 = vst [vmem:[%s1353_s12 + $0xa8] sm:$0xff] %v675_v8  ;;  %899 = vst [vmem:[%s1353_s12 + $0x1a8] sm:$0xff] %v803_v9 }
 0x145   : > { %v1124_v10 = vpop.f32.mrb[24].mxu0  ;;  %v1156_v11 = vpop.f32.mrb[24].mxu1 }
 0x146   : > { %v696_v12 = vadd.f32 %v1124_v10, %v1348_v40  ;;  %v824_v13 = vadd.f32 %v1156_v11, %v1348_v40  ;;  %v687_v14 = vpop.f32.mrb[25].mxu0  ;;  %v815_v15 = vpop.f32.mrb[25].mxu1 }
 0x147   : > { %v688_v16 = vadd.f32 %v1348_v40, %v687_v14  ;;  %v816_v17 = vadd.f32 %v1348_v40, %v815_v15  ;;  %v1125_v18 = vpop.f32.mrb[26].mxu0  ;;  %v1157_v19 = vpop.f32.mrb[26].mxu1 }
 0x148   : > { %872 = vst [vmem:[%s1353_s12 + $0xd0] sm:$0xff] %v696_v12  ;;  %904 = vst [vmem:[%s1353_s12 + $0x1d0] sm:$0xff] %v824_v13  ;;  %v699_v20 = vadd.f32 %v1125_v18, %v1348_v40  ;;  %v827_v21 = vadd.f32 %v1157_v19, %v1348_v40  ;;  %v690_v22 = vpop.f32.mrb[27].mxu0  ;;  %v818_v23 = vpop.f32.mrb[27].mxu1 }
 0x149   : > { %870 = vst [vmem:[%s1353_s12 + $0xc0] sm:$0xff] %v688_v16  ;;  %902 = vst [vmem:[%s1353_s12 + $0x1c0] sm:$0xff] %v816_v17  ;;  %v691_v24 = vadd.f32 %v1348_v40, %v690_v22  ;;  %v819_v25 = vadd.f32 %v1348_v40, %v818_v23 }
 0x14a   : > { %873 = vst [vmem:[%s1353_s12 + $0xd8] sm:$0xff] %v699_v20  ;;  %905 = vst [vmem:[%s1353_s12 + $0x1d8] sm:$0xff] %v827_v21 }
 0x14b   : > { %871 = vst [vmem:[%s1353_s12 + $0xc8] sm:$0xff] %v691_v24  ;;  %903 = vst [vmem:[%s1353_s12 + $0x1c8] sm:$0xff] %v819_v25 }
 0x14d   : > { %v1128_v26 = vpop.f32.mrb[28].mxu0  ;;  %v1160_v27 = vpop.f32.mrb[28].mxu1 }
 0x14e   : > { %v712_v28 = vadd.f32 %v1128_v26, %v1348_v40  ;;  %v840_v29 = vadd.f32 %v1160_v27, %v1348_v40  ;;  %v703_v30 = vpop.f32.mrb[29].mxu0  ;;  %v831_v31 = vpop.f32.mrb[29].mxu1 }
 0x14f   : > { %v704_v32 = vadd.f32 %v1348_v40, %v703_v30  ;;  %v832_v33 = vadd.f32 %v1348_v40, %v831_v31  ;;  %v1129_v34 = vpop.f32.mrb[30].mxu0  ;;  %v1161_v35 = vpop.f32.mrb[30].mxu1 }
 0x150   : > { %876 = vst [vmem:[%s1353_s12 + $0xf0] sm:$0xff] %v712_v28  ;;  %908 = vst [vmem:[%s1353_s12 + $0x1f0] sm:$0xff] %v840_v29  ;;  %v715_v36 = vadd.f32 %v1129_v34, %v1348_v40  ;;  %v843_v37 = vadd.f32 %v1161_v35, %v1348_v40  ;;  %v706_v38 = vpop.f32.mrb[31].mxu0  ;;  %v834_v39 = vpop.f32.mrb[31].mxu1 }
 0x151   : > { %874 = vst [vmem:[%s1353_s12 + $0xe0] sm:$0xff] %v704_v32  ;;  %906 = vst [vmem:[%s1353_s12 + $0x1e0] sm:$0xff] %v832_v33  ;;  %v707_v41 = vadd.f32 %v1348_v40, %v706_v38  ;;  %v835_v42 = vadd.f32 %v1348_v40, %v834_v39 }
 0x152   : > { %877 = vst [vmem:[%s1353_s12 + $0xf8] sm:$0xff] %v715_v36  ;;  %909 = vst [vmem:[%s1353_s12 + $0x1f8] sm:$0xff] %v843_v37 }
 0x153   : > { %875 = vst [vmem:[%s1353_s12 + $0xe8] sm:$0xff] %v707_v41  ;;  %907 = vst [vmem:[%s1353_s12 + $0x1e8] sm:$0xff] %v835_v42 }
 0x154 PF: > { %s20_s20 = sadd.s32 1, %s1247_s20  }
 0x155   : > { %p17_p11 = scmp.ge.s32.totalorder %s20_s20, 5  }
 0x157   :  { %19 = sbr.rel (!%p17_p11) target bundleno = 16 (0x10), region = 68 }

</bundles_post_ra>
